<compile_context>
chip_gen: v7x
topology: tpu7x:2x2x1
jax: 0.10.0
libtpu: 0.0.40
codegen_flags: <defaults>
</compile_context>

<pallas_src>
import jax
import jax.numpy as jnp
from jax import lax
from jax.experimental import pallas as pl
from jax.experimental.pallas import tpu as pltpu


def _temb_fusion_kernel(temb_ref, wt_ref, b_ref, x_ref, o_ref):
    # temb_ref: (N, 1, 512) resident; wt_ref: (512, C) resident; b_ref: (1, C)
    # x_ref / o_ref: (1, C, ts) lane-dense activation tile.
    n = pl.program_id(0)
    t = temb_ref[n].astype(jnp.float32)                    # (1, 512)
    t = t * jax.nn.sigmoid(t)                              # silu / swish
    h = jnp.dot(t, wt_ref[...].astype(jnp.float32),
                preferred_element_type=jnp.float32)        # (1, C)
    h = h + b_ref[...].astype(jnp.float32)
    o_ref[...] = (x_ref[...].astype(jnp.float32) + h[:, :, None]).astype(o_ref.dtype)


def _round_up(v, m):
    return ((v + m - 1) // m) * m


def temb_fusion(x, temb, weight, bias, *, tile_bytes=2 * 1024 * 1024):
    """TembFusion forward.

    x:      (N, C, D, H, W)
    temb:   (N, 512) or None
    weight: (C, 512)   -- torch.nn.Linear(512, C).weight
    bias:   (C,)       -- torch.nn.Linear(512, C).bias
    """
    if temb is None:
        # Module returns x unchanged when no time embedding is given.
        return x

    N, C, D, H, W = x.shape
    S = D * H * W
    x_flat = x.reshape(N, C, S)                  # contiguous view, no transpose

    itemsize = jnp.dtype(x.dtype).itemsize
    # Spatial tile: lane-dense (multiple of 128), sized toward `tile_bytes`
    # per x block but never larger than the (128-padded) spatial extent.
    ts_cap = max(128, (tile_bytes // (C * itemsize)) // 128 * 128)
    ts = min(_round_up(S, 128), ts_cap)
    S_pad = _round_up(S, ts)
    if S_pad != S:
        x_flat = jnp.pad(x_flat, ((0, 0), (0, 0), (0, S_pad - S)))

    temb3 = temb.reshape(N, 1, 512)              # leading axis indexed in-kernel
    wt = weight.T                                # (512, C)
    b2 = bias.reshape(1, C)

    grid = (N, S_pad // ts)
    out_flat = pl.pallas_call(
        _temb_fusion_kernel,
        out_shape=jax.ShapeDtypeStruct((N, C, S_pad), x.dtype),
        grid_spec=pltpu.PrefetchScalarGridSpec(
            num_scalar_prefetch=0,
            grid=grid,
            in_specs=[
                pl.BlockSpec((N, 1, 512), lambda n, s: (0, 0, 0)),   # temb (resident)
                pl.BlockSpec((512, C), lambda n, s: (0, 0)),         # W^T  (resident)
                pl.BlockSpec((1, C), lambda n, s: (0, 0)),           # bias (resident)
                pl.BlockSpec((1, C, ts), lambda n, s: (n, 0, s)),    # x tile
            ],
            out_specs=pl.BlockSpec((1, C, ts), lambda n, s: (n, 0, s)),
        ),
        compiler_params=pltpu.CompilerParams(
            dimension_semantics=("parallel", "parallel")),
    )(temb3, wt, b2, x_flat)

    if S_pad != S:
        out_flat = out_flat[:, :, :S]
    return out_flat.reshape(N, C, D, H, W)


def _reference(x, temb, weight, bias):
    # Pure-JAX reference of the PyTorch forward.
    if temb is None:
        return x
    t = temb * jax.nn.sigmoid(temb)
    h = jnp.matmul(t, weight.T, precision=lax.Precision.HIGHEST) + bias
    return x + h[:, :, None, None, None]


if __name__ == "__main__":
    key = jax.random.PRNGKey(0)
    kx, kt, kw, kb = jax.random.split(key, 4)

    N, n_filters_out = 2, 4
    D = H = W = 16
    temb_ch = 512

    x = jax.random.normal(kx, (N, n_filters_out, D, H, W), dtype=jnp.float32)
    temb = jax.random.normal(kt, (N, temb_ch), dtype=jnp.float32)

    # Deterministic synthetic Linear(512, n_filters_out) params.
    bound = 1.0 / (temb_ch ** 0.5)
    weight = jax.random.uniform(kw, (n_filters_out, temb_ch),
                                minval=-bound, maxval=bound, dtype=jnp.float32)
    bias = jax.random.uniform(kb, (n_filters_out,),
                              minval=-bound, maxval=bound, dtype=jnp.float32)

    out = jax.block_until_ready(temb_fusion(x, temb, weight, bias))
    ref = jax.block_until_ready(_reference(x, temb, weight, bias))

    assert out.shape == x.shape
    assert jnp.allclose(out, ref, atol=2e-3, rtol=2e-3), "mismatch vs reference"

    # temb is None branch: identity passthrough.
    out_none = jax.block_until_ready(temb_fusion(x, None, weight, bias))
    assert jnp.allclose(out_none, x)

    print("KERNEL_OK")
</pallas_src>

<mosaic_0001>
module attributes {stable_mosaic.version = 11 : i64} {
  func.func @_temb_fusion_kernel(%arg0: i32, %arg1: i32, %arg2: memref<2x1x512xf32, #tpu.memory_space<vmem>>, %arg3: memref<512x4xf32, #tpu.memory_space<vmem>>, %arg4: memref<1x4xf32, #tpu.memory_space<vmem>>, %arg5: memref<1x4x4096xf32, #tpu.memory_space<vmem>>, %arg6: memref<1x4x4096xf32, #tpu.memory_space<vmem>>) attributes {dimension_semantics = [#tpu.dimension_semantics<parallel>, #tpu.dimension_semantics<parallel>], iteration_bounds = array<i64: 2, 1>, scalar_prefetch = 0 : i64, scratch_operands = 0 : i64, tpu.core_type = #tpu.core_type<tc>, window_params = [{pipeline_mode = #tpu.pipeline_mode<synchronous>, transform_indices = @transform_0, window_bounds = array<i64: 2, 1, 512>}, {pipeline_mode = #tpu.pipeline_mode<synchronous>, transform_indices = @transform_1, window_bounds = array<i64: 512, 4>}, {pipeline_mode = #tpu.pipeline_mode<synchronous>, transform_indices = @transform_2, window_bounds = array<i64: 1, 4>}, {transform_indices = @transform_3, window_bounds = array<i64: 1, 4, 4096>}, {transform_indices = @transform_4, window_bounds = array<i64: 1, 4, 4096>}]} {
    %0 = arith.index_cast %arg0 : i32 to index
    %c0 = arith.constant 0 : index
    %c0_0 = arith.constant 0 : index
    %1 = vector.load %arg2[%0, %c0, %c0_0] : memref<2x1x512xf32, #tpu.memory_space<vmem>>, vector<1x1x512xf32>
    %2 = vector.shape_cast %1 : vector<1x1x512xf32> to vector<1x512xf32>
    %3 = arith.negf %2 : vector<1x512xf32>
    %4 = math.exp %3 : vector<1x512xf32>
    %cst = arith.constant 1.000000e+00 : f32
    %5 = vector.broadcast %cst : f32 to vector<1x512xf32>
    %6 = arith.addf %5, %4 : vector<1x512xf32>
    %7 = arith.divf %5, %6 : vector<1x512xf32>
    %8 = arith.mulf %2, %7 : vector<1x512xf32>
    %c0_1 = arith.constant 0 : index
    %c0_2 = arith.constant 0 : index
    %9 = vector.load %arg3[%c0_1, %c0_2] : memref<512x4xf32, #tpu.memory_space<vmem>>, vector<512x4xf32>
    %cst_3 = arith.constant dense<0.000000e+00> : vector<1x4xf32>
    %10 = tpu.matmul %8, %9, %cst_3 {dimension_numbers = #tpu.dot_dimension_numbers<[1], [0], [0], [1], [0, 0, 1, 1], [], []>} : vector<1x512xf32>, vector<512x4xf32>, vector<1x4xf32> -> vector<1x4xf32>
    %c0_4 = arith.constant 0 : index
    %c0_5 = arith.constant 0 : index
    %11 = vector.load %arg4[%c0_4, %c0_5] : memref<1x4xf32, #tpu.memory_space<vmem>>, vector<1x4xf32>
    %12 = arith.addf %10, %11 : vector<1x4xf32>
    %c0_6 = arith.constant 0 : index
    %c0_7 = arith.constant 0 : index
    %c0_8 = arith.constant 0 : index
    %13 = vector.load %arg5[%c0_6, %c0_7, %c0_8] : memref<1x4x4096xf32, #tpu.memory_space<vmem>>, vector<1x4x4096xf32>
    %14 = vector.shape_cast %12 : vector<1x4xf32> to vector<1x4x1xf32>
    %15 = vector.broadcast %14 : vector<1x4x1xf32> to vector<1x4x4096xf32>
    %16 = arith.addf %13, %15 : vector<1x4x4096xf32>
    %c0_9 = arith.constant 0 : index
    %c0_10 = arith.constant 0 : index
    %c0_11 = arith.constant 0 : index
    %17 = vector.load %arg6[%c0_9, %c0_10, %c0_11] : memref<1x4x4096xf32, #tpu.memory_space<vmem>>, vector<1x4x4096xf32>
    tpu.vector_store %arg6[%c0_9, %c0_10, %c0_11], %16 {strides = array<i32>} : memref<1x4x4096xf32, #tpu.memory_space<vmem>>, vector<1x4x4096xf32>,
    return
  }
  func.func @transform_0(%arg0: i32, %arg1: i32) -> (i32, i32, i32) {
    %c0_i32 = arith.constant 0 : i32
    %c0_i32_0 = arith.constant 0 : i32
    %c0_i32_1 = arith.constant 0 : i32
    %c0_i32_2 = arith.constant 0 : i32
    return %c0_i32, %c0_i32_0, %c0_i32_1 : i32, i32, i32
  }
  func.func @transform_1(%arg0: i32, %arg1: i32) -> (i32, i32) {
    %c0_i32 = arith.constant 0 : i32
    %c0_i32_0 = arith.constant 0 : i32
    %c0_i32_1 = arith.constant 0 : i32
    return %c0_i32, %c0_i32_0 : i32, i32
  }
  func.func @transform_2(%arg0: i32, %arg1: i32) -> (i32, i32) {
    %c0_i32 = arith.constant 0 : i32
    %c0_i32_0 = arith.constant 0 : i32
    %c0_i32_1 = arith.constant 0 : i32
    return %c0_i32, %c0_i32_0 : i32, i32
  }
  func.func @transform_3(%arg0: i32, %arg1: i32) -> (i32, i32, i32) {
    %c0_i32 = arith.constant 0 : i32
    %c0_i32_0 = arith.constant 0 : i32
    return %arg0, %c0_i32, %arg1 : i32, i32, i32
  }
  func.func @transform_4(%arg0: i32, %arg1: i32) -> (i32, i32, i32) {
    %c0_i32 = arith.constant 0 : i32
    %c0_i32_0 = arith.constant 0 : i32
    return %arg0, %c0_i32, %arg1 : i32, i32, i32
  }
}

</mosaic_0001>

<bundles_post_ra>
// kernel: tpu_custom_call.1
= control target key start
LH: loop header
LB: loop body
LE: loop exit
PB: predicated region body
PF: predicated region fallthrough
CT: control target
= control target key end

     0   :  { %9 = vsyncpa [#allocation3], 0  ;;  %s1274_s0 = inlined_call_operand.vmem [shape: f32[2,1,512], index: 0, kind: input, shape index: {}]   ;;  %s1275_s1 = inlined_call_operand.vmem [shape: f32[512,4], index: 1, kind: input, shape index: {}]   ;;  %s1276_s2 = inlined_call_operand.vmem [shape: f32[1,4], index: 2, kind: input, shape index: {}]   ;;  %s1277_s3 = inlined_call_operand.vmem [shape: f32[2,4,4096], index: 3, kind: input, shape index: {}]   ;;  %s1278_s4 = inlined_call_operand.hbm [shape: f32[2,4,4096], index: 4, kind: output, shape index: {}]  }
   0x1   :  { %11 = vsyncpa [#allocation3 + $0x1], 0  ;;  %s940_s15 = smov 0   ;;  %s942_s16 = smov 0  }
   0x2   :  { %s944_s17 = smov 0   ;;  %s946_s18 = smov 0  }
   0x3   :  { %s948_s19 = smov 0   ;;  %s950_s20 = smov 0  }
   0x4 LB: > { %s622_s21 = sadd.s32 4294967295, %s911_s20   ;;  %s623_s22 = sadd.s32 4294967294, %s911_s20   ;;  %s911_s20 = sphi %s950_s20, %s17_s20   ;;  %s907_s19 = sphi %s948_s19, %s1285_s19   ;;  %s903_s18 = sphi %s946_s18, %s1284_s18   ;;  %s899_s17 = sphi %s944_s17, %s1283_s17   ;;  %s895_s16 = sphi %s942_s16, %s1282_s16   ;;  %s891_s15 = sphi %s940_s15, %s1281_s15  }
   0x5   : > { %s29_s23 = sadd.s32 1, %s907_s19  ;;  %s129_s24 = sadd.s32 1, %s899_s17 }
   0x6   : > { %p31_p0 = scmp.ge.s32.totalorder %s29_s23, 2  ;;  %p139_p1 = scmp.ne.s32.totalorder %s899_s17, %s895_s16 }
   0x7   : > { %p140_p2 = scmp.eq.s32.totalorder %s622_s21, 1  ;;  %p145_p3 = scmp.ne.s32.totalorder %s895_s16, %s891_s15 }
   0x8   : > { %s1287_s23 = smov (%p31_p0, %s29_s23), 0  ;;  %p146_p5 = scmp.eq.s32.totalorder %s623_s22, 1 }
   0x9   : > { %p980_p4 = por %p140_p2, %p139_p1  ;;  %s124_s26 = ssub.s32 %s907_s19, %s1287_s23 }
   0xa   : > { %p626_p6 = scmp.ge.s32.totalorder %s911_s20, 1  ;;  %p127_p7 = scmp.eq.s32.totalorder %s124_s26, 0 }
   0xb   : > { %p987_p8 = por %p146_p5, %p145_p3  ;;  %p186_p9 = scmp.lt.s32.totalorder %s911_s20, 3 }
   0xc   : > { %s993_s28 = scalar_select %p127_p7, %s899_s17, %s129_s24  }
   0xd   : > { %p187_p10 = pnand %p626_p6, %p186_p9 }
   0xe   : > { %v253_v0 = vld [vmem:[%s1275_s1 + $0x80] sm:$0xff] (!%p187_p10)  ;;  %v254_v1 = vld [vmem:[%s1275_s1 + $0x88] sm:$0xff] (!%p187_p10)  ;;  %v255_v11 = vld [vmem:[%s1275_s1 + $0x90] sm:$0xff] (!%p187_p10)  ;;  %s630_s11 = sshll.u32 (!%p187_p10), %s903_s18, 2  ;;  %p217_p11 = scmp.lt.s32.totalorder (!%p187_p10), %s903_s18, 1 }
   0xf   : > { %190 = sbr.rel (%p187_p10) target bundleno = 427 (0x1ab), region = 36  ;;  %v237_v2 = vld [vmem:[%s1275_s1] sm:$0xff] (!%p187_p10)  ;;  %v709_v3 = vpack.c.bf16 (!%p187_p10), %v254_v1, %v253_v0  ;;  %v238_v4 = vld [vmem:[%s1275_s1 + $0x8] sm:$0xff] (!%p187_p10)  ;;  %v256_v13 = vld [vmem:[%s1275_s1 + $0x98] sm:$0xff] (!%p187_p10)  ;;  %s228_s10 = scalar_lea.vmem (!%p187_p10), %s1274_s0, %s630_s11 }
  0x10   : > { %v285_v5 = vld [vmem:[%s1275_s1 + $0x180] sm:$0xff] (!%p187_p10)  ;;  %v286_v6 = vld [vmem:[%s1275_s1 + $0x188] sm:$0xff] (!%p187_p10)  ;;  %v711_v7 = vpack.c.bf16 (!%p187_p10), %v238_v4, %v237_v2  ;;  %v239_v14 = vld [vmem:[%s1275_s1 + $0x10] sm:$0xff] (!%p187_p10)  ;;  %v713_v16 = vpack.c.bf16 (!%p187_p10), %v256_v13, %v255_v11  ;;  %s213_s13 = sand.u32 (!%p187_p10), 1, %s895_s16   ;;  %s638_s24 = sshll.u32 (!%p187_p10), %s903_s18, 11 }
  0x11   : > { %v741_v8 = vpack.c.bf16 (!%p187_p10), %v286_v6, %v285_v5  ;;  %v269_v9 = vld [vmem:[%s1275_s1 + $0x100] sm:$0xff] (!%p187_p10)  ;;  %v270_v10 = vld [vmem:[%s1275_s1 + $0x108] sm:$0xff] (!%p187_p10)  ;;  %710 = vmatprep.subr.bf16.mxu0 (!%p187_p10), %v709_v3  ;;  %v240_v15 = vld [vmem:[%s1275_s1 + $0x18] sm:$0xff] (!%p187_p10)  ;;  %s627_s22 = sshll.u32 (!%p187_p10), %s213_s13, 7  ;;  %s1217_s30 = scalar_lea.hbm (!%p187_p10), %s1278_s4, %s638_s24 }
  0x12   : > { %v743_v12 = vpack.c.bf16 (!%p187_p10), %v270_v10, %v269_v9  ;;  %712 = vmatpush3.bf16.msra.mxu0 (!%p187_p10), %v711_v7  ;;  %v715_v17 = vpack.c.bf16 (!%p187_p10), %v240_v15, %v239_v14  ;;  %v287_v18 = vld [vmem:[%s1275_s1 + $0x190] sm:$0xff] (!%p187_p10)  ;;  %v288_v19 = vld [vmem:[%s1275_s1 + $0x198] sm:$0xff] (!%p187_p10)  ;;  %v257_v23 = vld [vmem:[%s1275_s1 + $0xa0] sm:$0xff] (!%p187_p10)  ;;  %s1203_s26 = scalar_lea.vmem (!%p187_p10), [#allocation2], %s627_s22  ;;  %s528_s5 = scalar_lea.sflag (!%p187_p10), [#allocation3], %s213_s13 }
  0x13   : > { %742 = vmatprep.subr.bf16.mxu1 (!%p187_p10), %v741_v8  ;;  %v271_v20 = vld [vmem:[%s1275_s1 + $0x110] sm:$0xff] (!%p187_p10)  ;;  %v745_v21 = vpack.c.bf16 (!%p187_p10), %v288_v19, %v287_v18  ;;  %v272_v22 = vld [vmem:[%s1275_s1 + $0x118] sm:$0xff] (!%p187_p10)  ;;  %v258_v24 = vld [vmem:[%s1275_s1 + $0xa8] sm:$0xff] (!%p187_p10)  ;;  %714 = vmatprep.subr.bf16.mxu0 (!%p187_p10), %v713_v16  ;;  %s544_s11 = sshll.u32 (!%p187_p10), %s1203_s26, 4  ;;  %s914_s7 = smov (!%p187_p10), [#allocation2]   ;;  %s1219_s11 = int_to_ptr.vmem [resolvable:$true] %s544_s11 }
  0x14   : > { %744 = vmatpush3.bf16.msra.mxu1 (!%p187_p10), %v743_v12  ;;  %v747_v25 = vpack.c.bf16 (!%p187_p10), %v272_v22, %v271_v20  ;;  %v717_v26 = vpack.c.bf16 (!%p187_p10), %v258_v24, %v257_v23  ;;  %v241_v27 = vld [vmem:[%s1275_s1 + $0x20] sm:$0xff] (!%p187_p10)  ;;  %v242_v28 = vld [vmem:[%s1275_s1 + $0x28] sm:$0xff] (!%p187_p10)  ;;  %v259_v35 = vld [vmem:[%s1275_s1 + $0xb0] sm:$0xff] (!%p187_p10)  ;;  %s833_s6 = scalar_lea.vmem (!%p187_p10), %s1219_s11, 2048  ;;  %s837_s8 = sshll.u32 (!%p187_p10), %s914_s7, 4  ;;  %s838_s8 = int_to_ptr.vmem [resolvable:$false] %s837_s8 }
  0x15   : > { %v289_v29 = vld [vmem:[%s1275_s1 + $0x1a0] sm:$0xff] (!%p187_p10)  ;;  %746 = vmatprep.subr.bf16.mxu1 (!%p187_p10), %v745_v21  ;;  %v290_v30 = vld [vmem:[%s1275_s1 + $0x1a8] sm:$0xff] (!%p187_p10)  ;;  %v719_v33 = vpack.c.bf16 (!%p187_p10), %v242_v28, %v241_v27  ;;  %v260_v36 = vld [vmem:[%s1275_s1 + $0xb8] sm:$0xff] (!%p187_p10)  ;;  %p834_p12 = scmp.ne.s32.totalorder (!%p187_p10), %s1219_s11, %s833_s6  ;;  %p840_p1 = scmp.lt.s32.totalorder (!%p187_p10), %s1219_s11, %s838_s8 }
  0x16   : > { %v273_v31 = vld [vmem:[%s1275_s1 + $0x120] sm:$0xff]  ;;  %v274_v32 = vld [vmem:[%s1275_s1 + $0x128] sm:$0xff]  ;;  %716 = vmatpush3.bf16.msra.mxu0 %v715_v17  ;;  %v749_v34 = vpack.c.bf16 %v290_v30, %v289_v29  ;;  %v243_v37 = vld [vmem:[%s1275_s1 + $0x30] sm:$0xff]  ;;  %v721_v39 = vpack.c.bf16 %v260_v36, %v259_v35  ;;  %v303_v36 = vlaneseq  ;;  %s218_s9 = scalar_select %p217_p11, %s903_s18, 1 }
  0x17   : > { %718 = vmatprep.subr.bf16.mxu0 %v717_v26  ;;  %v751_v38 = vpack.c.bf16 %v274_v32, %v273_v31  ;;  %v244_v40 = vld [vmem:[%s1275_s1 + $0x38] sm:$0xff]  ;;  %v291_v41 = vld [vmem:[%s1275_s1 + $0x1b0] sm:$0xff]  ;;  %v261_v46 = vld [vmem:[%s1275_s1 + $0xc0] sm:$0xff]  ;;  %p835_p13 = pnand %p834_p12, %p980_p4 }
  0x18   : > { %748 = vmatpush3.bf16.msra.mxu1 %v747_v25  ;;  %v292_v42 = vld [vmem:[%s1275_s1 + $0x1b8] sm:$0xff]  ;;  %v275_v44 = vld [vmem:[%s1275_s1 + $0x130] sm:$0xff]  ;;  %v262_v47 = vld [vmem:[%s1275_s1 + $0xc8] sm:$0xff]  ;;  %v723_v48 = vpack.c.bf16 %v244_v40, %v243_v37  ;;  %v304_v37 = vshrl.u32 %v303_v36, 7  ;;  %s637_s12 = sshll.u32 %s218_s9, 7  ;;  %s839_s9 = scalar_lea.vmem %s838_s8, 4096 }
  0x19   : > { %750 = vmatprep.subr.bf16.mxu1 %v749_v34  ;;  %v753_v43 = vpack.c.bf16 %v292_v42, %v291_v41  ;;  %v276_v45 = vld [vmem:[%s1275_s1 + $0x138] sm:$0xff]  ;;  %v293_v49 = vld [vmem:[%s1275_s1 + $0x1c0] sm:$0xff]  ;;  %v294_v50 = vld [vmem:[%s1275_s1 + $0x1c8] sm:$0xff]  ;;  %v725_v52 = vpack.c.bf16 %v262_v47, %v261_v46  ;;  %s224_s21 = scalar_lea.vmem %s1277_s3, %s637_s12  ;;  %p836_p0 = pneg %p835_p13 }
  0x1a   : > { %720 = vmatpush3.bf16.msra.mxu0 %v719_v33  ;;  %v755_v51 = vpack.c.bf16 %v276_v45, %v275_v44  ;;  %v245_v53 = vld [vmem:[%s1275_s1 + $0x40] sm:$0xff]  ;;  %v246_v54 = vld [vmem:[%s1275_s1 + $0x48] sm:$0xff]  ;;  %v757_v56 = vpack.c.bf16 %v294_v50, %v293_v49  ;;  %v263_v58 = vld [vmem:[%s1275_s1 + $0xd0] sm:$0xff]  ;;  %v317_v40 = vsub.s32 3, %v304_v37  ;;  %v313_v41 = vsub.s32 2, %v304_v37  ;;  %p841_p2 = scmp.lt.s32.totalorder %s839_s9, %s833_s6 }
  0x1b   : > { %722 = vmatprep.subr.bf16.mxu0 %v721_v39  ;;  %v277_v55 = vld [vmem:[%s1275_s1 + $0x140] sm:$0xff]  ;;  %v278_v57 = vld [vmem:[%s1275_s1 + $0x148] sm:$0xff]  ;;  %v264_v59 = vld [vmem:[%s1275_s1 + $0xd8] sm:$0xff]  ;;  %v727_v62 = vpack.c.bf16 %v246_v54, %v245_v53  ;;  %v305_v39 = vsub.s32 0, %v304_v37 }
  0x1c   : > { %752 = vmatpush3.bf16.msra.mxu1 %v751_v38  ;;  %v295_v60 = vld [vmem:[%s1275_s1 + $0x1d0] sm:$0xff]  ;;  %v296_v61 = vld [vmem:[%s1275_s1 + $0x1d8] sm:$0xff]  ;;  %v759_v63 = vpack.c.bf16 %v278_v57, %v277_v55  ;;  %v729_v0 = vpack.c.bf16 %v264_v59, %v263_v58  ;;  %v265_v6 = vld [vmem:[%s1275_s1 + $0xe0] sm:$0xff]  ;;  %v309_v38 = vsub.s32 1, %v304_v37  ;;  %v913_v58 = vmov 839922192   ;;  %p842_p3 = por %p841_p2, %p840_p1 }
  0x1d   : > { %754 = vmatprep.subr.bf16.mxu1 %v753_v43  ;;  %v247_v1 = vld [vmem:[%s1275_s1 + $0x50] sm:$0xff]  ;;  %v248_v2 = vld [vmem:[%s1275_s1 + $0x58] sm:$0xff]  ;;  %v761_v4 = vpack.c.bf16 %v296_v61, %v295_v60  ;;  %v266_v7 = vld [vmem:[%s1275_s1 + $0xe8] sm:$0xff]  ;;  %v488_v59 = vunpack.c.l.s4 %v913_v58 }
  0x1e   : > { %724 = vmatpush3.bf16.msra.mxu0 %v723_v48  ;;  %v279_v3 = vld [vmem:[%s1275_s1 + $0x150] sm:$0xff]  ;;  %v280_v5 = vld [vmem:[%s1275_s1 + $0x158] sm:$0xff]  ;;  %v297_v8 = vld [vmem:[%s1275_s1 + $0x1e0] sm:$0xff]  ;;  %v731_v10 = vpack.c.bf16 %v248_v2, %v247_v1  ;;  %v733_v13 = vpack.c.bf16 %v266_v7, %v265_v6  ;;  %p843_p5 = pnand %p842_p3, %p836_p0 }
  0x1f   : > { %726 = vmatprep.subr.bf16.mxu0 %v725_v52  ;;  %v298_v9 = vld [vmem:[%s1275_s1 + $0x1e8] sm:$0xff]  ;;  %v249_v11 = vld [vmem:[%s1275_s1 + $0x60] sm:$0xff]  ;;  %v763_v12 = vpack.c.bf16 %v280_v5, %v279_v3  ;;  %v267_v19 = vld [vmem:[%s1275_s1 + $0xf0] sm:$0xff]  ;;  %v489_v60 = vunpack.c.0.s8 %v488_v59 }
  0x20   : > { %756 = vmatpush3.bf16.msra.mxu1 %v755_v51  ;;  %v250_v14 = vld [vmem:[%s1275_s1 + $0x68] sm:$0xff]  ;;  %v281_v15 = vld [vmem:[%s1275_s1 + $0x160] sm:$0xff]  ;;  %v765_v17 = vpack.c.bf16 %v298_v9, %v297_v8  ;;  %v268_v20 = vld [vmem:[%s1275_s1 + $0xf8] sm:$0xff] }
  0x21   : > { %758 = vmatprep.subr.bf16.mxu1 %v757_v56  ;;  %v229_v16 = vld [vmem:[%s228_s10] sm:$0xf]  ;;  %v282_v18 = vld [vmem:[%s1275_s1 + $0x168] sm:$0xff]  ;;  %v299_v22 = vld [vmem:[%s1275_s1 + $0x1f0] sm:$0xff]  ;;  %v735_v24 = vpack.c.bf16 %v250_v14, %v249_v11  ;;  %v737_v26 = vpack.c.bf16 %v268_v20, %v267_v19  ;;  %v492_v61 = vsub.s32 %v489_v60, %v304_v37 }
  0x22   : > { %728 = vmatpush3.bf16.msra.mxu0 %v727_v62  ;;  %v631_v21 = vmul.f32 -1.442695, %v229_v16  ;;  %v300_v23 = vld [vmem:[%s1275_s1 + $0x1f8] sm:$0xff]  ;;  %v767_v25 = vpack.c.bf16 %v282_v18, %v281_v15  ;;  %v251_v27 = vld [vmem:[%s1275_s1 + $0x70] sm:$0xff]  ;;  %v301_v50 = vld [vmem:[%s1276_s2] sm:$0x1] }
  0x23   : > { %730 = vmatprep.subr.bf16.mxu0 %v729_v0  ;;  %v252_v28 = vld [vmem:[%s1275_s1 + $0x78] sm:$0xff]  ;;  %v769_v29 = vpack.c.bf16 %v300_v23, %v299_v22  ;;  %v283_v30 = vld [vmem:[%s1275_s1 + $0x170] sm:$0xff]  ;;  %v463_v62 = vld [vmem:[%s224_s21] sm:$0xff] }
  0x24   : > { %760 = vmatpush3.bf16.msra.mxu1 %v759_v63  ;;  %829 = vpow2.f32 %v631_v21  ;;  %v284_v31 = vld [vmem:[%s1275_s1 + $0x178] sm:$0xff]  ;;  %v739_v32 = vpack.c.bf16 %v252_v28, %v251_v27  ;;  %v464_v63 = vld [vmem:[%s224_s21 + $0x8] sm:$0xff]  ;;  %v465_v0 = vld [vmem:[%s224_s21 + $0x10] sm:$0xff] }
  0x25   : > { %762 = vmatprep.subr.bf16.mxu1 %v761_v4  ;;  %v771_v33 = vpack.c.bf16 %v284_v31, %v283_v30  ;;  %v466_v1 = vld [vmem:[%s224_s21 + $0x18] sm:$0xff]  ;;  %v467_v3 = vld [vmem:[%s224_s21 + $0x20] sm:$0xff]  ;;  %v468_v4 = vld [vmem:[%s224_s21 + $0x28] sm:$0xff] }
  0x26   : > { %732 = vmatpush3.bf16.msra.mxu0 %v731_v10  ;;  %v469_v5 = vld [vmem:[%s224_s21 + $0x30] sm:$0xff]  ;;  %v470_v7 = vld [vmem:[%s224_s21 + $0x38] sm:$0xff]  ;;  %v471_v8 = vld [vmem:[%s224_s21 + $0x40] sm:$0xff] }
  0x27   : > { %734 = vmatprep.subr.bf16.mxu0 %v733_v13  ;;  %v472_v9 = vld [vmem:[%s224_s21 + $0x48] sm:$0xff]  ;;  %v473_v10 = vld [vmem:[%s224_s21 + $0x50] sm:$0xff]  ;;  %v474_v11 = vld [vmem:[%s224_s21 + $0x58] sm:$0xff] }
  0x28   : > { %764 = vmatpush3.bf16.msra.mxu1 %v763_v12  ;;  %v475_v12 = vld [vmem:[%s224_s21 + $0x60] sm:$0xff]  ;;  %v476_v13 = vld [vmem:[%s224_s21 + $0x68] sm:$0xff]  ;;  %v477_v14 = vld [vmem:[%s224_s21 + $0x70] sm:$0xff] }
  0x29   : > { %766 = vmatprep.subr.bf16.mxu1 %v765_v17  ;;  %v478_v15 = vld [vmem:[%s224_s21 + $0x78] sm:$0xff] }
  0x2a   : > { %736 = vmatpush3.bf16.msra.mxu0 %v735_v24 }
  0x2b   : > { %738 = vmatprep.subr.bf16.mxu0 %v737_v26 }
  0x2c   : > { %768 = vmatpush3.bf16.msra.mxu1 %v767_v25 }
  0x2d   : > { %770 = vmatprep.subr.bf16.mxu1 %v769_v29 }
  0x2e   : > { %740 = vmatpush3.bf16.msra.mxu0 %v739_v32  ;;  %v830_v34 = vpop.eup %829 }
  0x2f   : > { %v233_v35 = vadd.f32 1.0, %v830_v34 }
  0x30   : > { %772 = vmatpush3.bf16.msra.mxu1 %v771_v33 }
  0x31   : > { %831 = vrcp.f32 %v233_v35 }
  0x3b   : > { %v832_v42 = vpop.eup %831 }
  0x3c   : > { %v236_v43 = vmul.f32 %v832_v42, %v229_v16 }
  0x3e   : > { %v310_v44 = vrot.slane %v236_v43, %v309_v38  ;;  %v306_v45 = vrot.slane %v236_v43, %v305_v39  ;;  %v318_v46 = vrot.slane %v236_v43, %v317_v40  ;;  %v314_v47 = vrot.slane %v236_v43, %v313_v41 }
  0x40   : > { %387 = vmatprep.mubr.f32.mxu0 %v310_v44  ;;  %457 = vmatprep.mubr.f32.mxu1 %v318_v46 }
  0x41   : > { %388 = vmatmul.mubr.f32.vlgmr.msra.gmra.mrb[0].mxu0 %v306_v45  ;;  %458 = vmatmul.mubr.f32.vlgmr.msra.gmra.mrb[0].mxu1 %v314_v47 }
 0x114   : > { %v671_v48 = vpop.f32.mrb[0].mxu0  ;;  %v706_v49 = vpop.f32.mrb[0].mxu1 }
 0x115   : > { %v672_v51 = vpop.f32.mrb[1].mxu0  ;;  %v707_v52 = vpop.f32.mrb[1].mxu1 }
 0x116   : > { %v673_v53 = vadd.f32 %v672_v51, %v671_v48  ;;  %v708_v54 = vadd.f32 %v707_v52, %v706_v49 }
 0x118   : > { %v390_v55 = vadd.f32 %v673_v53, %v301_v50 }
 0x11a   : > { %v460_v56 = vadd.f32 %v708_v54, %v390_v55 }
 0x11c   : > { %v482_v57 = vrot.slane %v460_v56, %v305_v39 }
 0x11e   : > { %484 = vbcast.lane.b32.xlu0 %v482_v57, 256 }
 0x190   : > { %v485_v2 = vpop.permute.xlu0 %484 }
 0x191   : > { %v493_v6 = vrot.slane %v485_v2, %v492_v61 }
 0x193   : > { %v495_v16 = vadd.f32 %v493_v6, %v463_v62  ;;  %v496_v17 = vadd.f32 %v493_v6, %v464_v63  ;;  %v497_v18 = vadd.f32 %v493_v6, %v465_v0  ;;  %v498_v19 = vadd.f32 %v493_v6, %v466_v1 }
 0x194   : > { %v499_v20 = vadd.f32 %v493_v6, %v467_v3  ;;  %v500_v21 = vadd.f32 %v493_v6, %v468_v4  ;;  %v501_v22 = vadd.f32 %v493_v6, %v469_v5  ;;  %v502_v23 = vadd.f32 %v493_v6, %v470_v7 }
 0x195   : > { %v503_v24 = vadd.f32 %v493_v6, %v471_v8  ;;  %v504_v25 = vadd.f32 %v493_v6, %v472_v9  ;;  %v505_v26 = vadd.f32 %v493_v6, %v473_v10  ;;  %v506_v27 = vadd.f32 %v493_v6, %v474_v11  ;;  %511 = vst [vmem:[%s1203_s26] sm:$0xff] %v495_v16 }
 0x196   : > { %512 = vst [vmem:[%s1203_s26 + $0x8] sm:$0xff] %v496_v17  ;;  %513 = vst [vmem:[%s1203_s26 + $0x10] sm:$0xff] %v497_v18  ;;  %v507_v28 = vadd.f32 %v493_v6, %v475_v12  ;;  %v508_v29 = vadd.f32 %v493_v6, %v476_v13  ;;  %v509_v30 = vadd.f32 %v493_v6, %v477_v14 }
 0x197   : > { %514 = vst [vmem:[%s1203_s26 + $0x18] sm:$0xff] %v498_v19  ;;  %v510_v31 = vadd.f32 %v493_v6, %v478_v15  ;;  %515 = vst [vmem:[%s1203_s26 + $0x20] sm:$0xff] %v499_v20 }
 0x198   : > { %516 = vst [vmem:[%s1203_s26 + $0x28] sm:$0xff] %v500_v21  ;;  %517 = vst [vmem:[%s1203_s26 + $0x30] sm:$0xff] %v501_v22 }
 0x199   : > { %518 = vst [vmem:[%s1203_s26 + $0x38] sm:$0xff] %v502_v23  ;;  %519 = vst [vmem:[%s1203_s26 + $0x40] sm:$0xff] %v503_v24 }
 0x19a   : > { %520 = vst [vmem:[%s1203_s26 + $0x48] sm:$0xff] %v504_v25  ;;  %521 = vst [vmem:[%s1203_s26 + $0x50] sm:$0xff] %v505_v26 }
 0x19b   : > { %522 = vst [vmem:[%s1203_s26 + $0x58] sm:$0xff] %v506_v27  ;;  %523 = vst [vmem:[%s1203_s26 + $0x60] sm:$0xff] %v507_v28 }
 0x19c   : > { %524 = vst [vmem:[%s1203_s26 + $0x68] sm:$0xff] %v508_v29  ;;  %525 = vst [vmem:[%s1203_s26 + $0x70] sm:$0xff] %v509_v30 }
 0x19d   : > { %526 = vst [vmem:[%s1203_s26 + $0x78] sm:$0xff] %v510_v31 }
 0x19e   : > { %846 = shalt.err (!%p843_p5)
}
 0x19f   : > { %s847_s12 = scalar_lea.hbm %s1217_s30, 2048  ;;  %s851_s10 = scalar_lea.hbm %s1278_s4, 4096 }
 0x1a0   : > { %p848_p6 = scmp.ne.s32.totalorder %s1217_s30, %s847_s12  ;;  %p852_p10 = scmp.lt.u32.totalorder %s1217_s30, %s1278_s4 }
 0x1a1   : > { %p853_p11 = scmp.lt.u32.totalorder %s851_s10, %s847_s12  ;;  %p855_p13 = scmp.lt.u32.totalorder %s847_s12, %s1217_s30 }
 0x1a2   : > { %p849_p7 = pnand %p848_p6, %p980_p4 }
 0x1a3   : > { %p854_p12 = por %p853_p11, %p852_p10 }
 0x1a4   : > { %p850_p9 = pneg %p849_p7 }
 0x1a5   : > { %p856_p0 = por %p855_p13, %p854_p12 }
 0x1a7   : > { %p857_p1 = pnand %p856_p0, %p850_p9 }
 0x1a9   : > { %860 = shalt.err (!%p857_p1)
}
 0x1aa   : > { %773 = dma.vmem_to_hbm [thread:$0]  (%p980_p4), %s1219_s11, 2048, %s1217_s30, %s528_s5  }
 0x1ab PF: > { %p779_p2 = scmp.ge.s32.totalorder %s911_s20, 2  ;;  %s556_s24 = sand.u32 1, %s891_s15  }
 0x1ac   : > { %s557_s26 = scalar_lea.sflag [#allocation3], %s556_s24 }
 0x1ad   : > { %p776_p3 = pnand %p779_p2, %p987_p8 }
 0x1af   : > { %886 = dma.done.wait (!%p776_p3), %s557_s26, 2048  }
 0x1b0   : > { %888 = vsyncadd (!%p776_p3), %s557_s26, 4294965248  ;;  %s17_s20 = sadd.s32 1, %s911_s20   ;;  %s1281_s15 = smov %s895_s16 }
 0x1b1   : > { %p14_p5 = scmp.ge.s32.totalorder %s17_s20, 4   ;;  %s1282_s16 = smov %s899_s17 }
 0x1b2   : > { %s1283_s17 = smov %s993_s28  ;;  %s1284_s18 = smov %s907_s19 }
 0x1b3   : > { %s1285_s19 = smov %s1287_s23  ;;  %16 = sbr.rel (!%p14_p5) target bundleno = 4 (0x4), region = 72 }
 0x1ba   :  { %562 = vsyncpa [#allocation3], 1 }
 0x1bb   :  { %564 = vsyncpa [#allocation3 + $0x1], 1 }

</bundles_post_ra>
